<compile_context>
chip_gen: v6e
topology: v6e:2x2x1
jax: 0.10.0
libtpu: 0.0.40
codegen_flags: <defaults>
</compile_context>

<pallas_src>
import numpy as np
import jax
import jax.numpy as jnp
from jax.experimental import pallas as pl
from jax.experimental.pallas import tpu as pltpu

IN_FEATURES = 24
H1 = 32            # output of input linear: input_weight[:24*32].view(32, 24)
H2 = 64            # node-block / classifier width
NUM_CLASSES = 6
OUT_PAD = 8        # narrow padded logits width (last block dim == full array dim)
BN_EPS = 1e-5      # PyTorch BatchNorm1d default eps


def _round_up(n, m):
    return ((n + m - 1) // m) * m


# --------------------------------------------------------------------------- #
# Kernel: per-batch-tile fused MLP (3 matmuls, biases, ReLU, clamp).
# --------------------------------------------------------------------------- #
def _legacy_node_kernel(x_ref, w1_ref, b1_ref, w2_ref, b2_ref, w3_ref, b3_ref,
                        out_ref):
    # f32 -> bf16 cast of the activations happens here (free VPU work); x is
    # streamed from HBM as f32, avoiding a separate host-side cast pass.
    x = x_ref[...].astype(w1_ref.dtype)                                # (TB, 24)

    # input linear (+ folded BN1) -> ReLU -> clamp(-10, 10) (lower bound is
    # redundant after ReLU); dropout = identity in eval mode.
    h = jnp.dot(x, w1_ref[...], preferred_element_type=jnp.float32) + b1_ref[...]
    h = jnp.minimum(jnp.maximum(h, 0.0), 10.0)                         # (TB, 32)

    # classifier linear with the NODE-block expand / sigmoid-mask / +1e-8 and
    # BN2 folded into (w2, b2) -> ReLU ; dropout = identity.
    h2 = jnp.dot(h.astype(w2_ref.dtype), w2_ref[...],
                 preferred_element_type=jnp.float32) + b2_ref[...]
    h2 = jnp.maximum(h2, 0.0)                                          # (TB, 64)

    # final linear into an 8-wide padded logits array (narrow HBM writeback).
    out_ref[...] = (
        jnp.dot(h2.astype(w3_ref.dtype), w3_ref[...],
                preferred_element_type=jnp.float32) + b3_ref[...]
    ).astype(out_ref.dtype)                                            # (TB, 8)


# --------------------------------------------------------------------------- #
# Host-side parameter folding (exact algebra, done in f32).
# --------------------------------------------------------------------------- #
def fold_params(raw, *, compute_dtype=jnp.bfloat16):
    """raw: un-folded params; linear weights stored as (in, out) = torch W.T."""
    # BN1 (eval) folded into the input linear.
    s1 = raw["g1"] * jax.lax.rsqrt(raw["v1"] + BN_EPS)                  # (32,)
    w1 = raw["w1"] * s1[None, :]                                        # (24, 32)
    b1 = (raw["b1"] - raw["m1"]) * s1 + raw["be1"]                      # (32,)

    # NODE block: clamp -> adaptive_avg_pool1d(32->64) (exact x2 repeat) ->
    # * sigmoid(clamp(fmask)) -> + 1e-8.  Repeat + mask + eps are affine and
    # fold exactly into the classifier linear; BN2 folds on top.
    sfm = jax.nn.sigmoid(jnp.clip(raw["fmask"], -10.0, 10.0))           # (64,)
    expand = np.zeros((H1, H2), np.float32)                             # out[:, j] = in[:, j//2]
    expand[np.arange(H1), 2 * np.arange(H1)] = 1.0
    expand[np.arange(H1), 2 * np.arange(H1) + 1] = 1.0
    w2_eff = (jnp.asarray(expand) * sfm[None, :]) @ raw["w2"]           # (32, 64)
    b2_eff = raw["b2"] + 1e-8 * jnp.sum(raw["w2"], axis=0)              # (64,)
    s2 = raw["g2"] * jax.lax.rsqrt(raw["v2"] + BN_EPS)                  # (64,)
    w2 = w2_eff * s2[None, :]
    b2 = (b2_eff - raw["m2"]) * s2 + raw["be2"]

    # Final linear, zero-padded to OUT_PAD (=8) columns.
    w3 = jnp.zeros((H2, OUT_PAD), jnp.float32).at[:, :NUM_CLASSES].set(raw["w3"])
    b3 = jnp.zeros((OUT_PAD,), jnp.float32).at[:NUM_CLASSES].set(raw["b3"])

    return {
        "w1": w1.astype(compute_dtype), "b1": b1.reshape(1, H1).astype(jnp.float32),
        "w2": w2.astype(compute_dtype), "b2": b2.reshape(1, H2).astype(jnp.float32),
        "w3": w3.astype(compute_dtype), "b3": b3.reshape(1, OUT_PAD).astype(jnp.float32),
    }


# --------------------------------------------------------------------------- #
# Wrapper: batch-tiled pallas_call with VMEM-resident weights.
# --------------------------------------------------------------------------- #
def legacy_node_model_forward(x, folded, *, tile_b=8192):
    """x: (B, ...) flattening to (B, 24).  Returns (B, NUM_CLASSES) f32 logits."""
    B = x.shape[0]
    x_flat = x.reshape(B, -1).astype(jnp.float32)   # bf16 cast happens in-kernel

    # Batch tile: capped at ceil(B/2) (rounded up to 16) so the grid has >= 2
    # "parallel" steps whenever possible -> both v7x TensorCores get work;
    # the floor of 16 covers bf16 sublane packing and the f32 (8,128) rule.
    tb = max(16, min(tile_b, _round_up(pl.cdiv(B, 2), 16)))
    grid = (pl.cdiv(B, tb),)
    const2 = lambda i: (0, 0)   # weights/biases: fetched once, stay resident

    grid_spec = pltpu.PrefetchScalarGridSpec(
        num_scalar_prefetch=0,
        grid=grid,
        in_specs=[
            pl.BlockSpec((tb, IN_FEATURES), lambda i: (i, 0)),   # batch tile
            pl.BlockSpec((IN_FEATURES, H1), const2),
            pl.BlockSpec((1, H1), const2),
            pl.BlockSpec((H1, H2), const2),
            pl.BlockSpec((1, H2), const2),
            pl.BlockSpec((H2, OUT_PAD), const2),
            pl.BlockSpec((1, OUT_PAD), const2),
        ],
        out_specs=pl.BlockSpec((tb, OUT_PAD), lambda i: (i, 0)),
    )

    # VMEM budget: the (tb, 24) f32 input tile and the (tb, 8) f32 output tile
    # each lane-pad to 128 lanes in VMEM -> ~2 KiB/row double-buffered total
    # (tb=8192 -> ~16 MiB); 40 MiB fits every generation incl. v7x (64 MiB).
    vmem_limit = 40 * 1024 * 1024

    # Advisory cost hint: this kernel is memory-bound (tiny flops).
    weight_bytes = (IN_FEATURES * H1 + H1 * H2 + H2 * OUT_PAD) * 2 \
        + (H1 + H2 + OUT_PAD) * 4
    cost = pl.CostEstimate(
        flops=2 * B * (IN_FEATURES * H1 + H1 * H2 + H2 * OUT_PAD),
        transcendentals=0,
        bytes_accessed=B * (IN_FEATURES * 4 + OUT_PAD * 4) + weight_bytes,
    )

    padded = pl.pallas_call(
        _legacy_node_kernel,
        out_shape=jax.ShapeDtypeStruct((B, OUT_PAD), jnp.float32),
        grid_spec=grid_spec,
        compiler_params=pltpu.CompilerParams(
            dimension_semantics=("parallel",),
            vmem_limit_bytes=vmem_limit),
        cost_estimate=cost,
    )(x_flat, folded["w1"], folded["b1"], folded["w2"], folded["b2"],
      folded["w3"], folded["b3"])

    # Cheap now (32 B read / 24 B write per row).  Consumers that can take the
    # 8-wide array directly may skip this slice entirely.
    return padded[:, :NUM_CLASSES]


# --------------------------------------------------------------------------- #
# Plain-JAX reference built from the UN-folded params (checks fold + kernel).
# --------------------------------------------------------------------------- #
def _reference(x, p):
    h = x @ p["w1"] + p["b1"]
    h = (h - p["m1"]) / jnp.sqrt(p["v1"] + BN_EPS) * p["g1"] + p["be1"]
    h = jnp.maximum(h, 0.0)
    h = jnp.clip(h, -10.0, 10.0)
    hu = jnp.repeat(h, 2, axis=1)                      # adaptive_avg_pool1d 32->64
    hu = hu * jax.nn.sigmoid(jnp.clip(p["fmask"], -10.0, 10.0)) + 1e-8
    h2 = hu @ p["w2"] + p["b2"]
    h2 = (h2 - p["m2"]) / jnp.sqrt(p["v2"] + BN_EPS) * p["g2"] + p["be2"]
    h2 = jnp.maximum(h2, 0.0)
    return h2 @ p["w3"] + p["b3"]


if __name__ == "__main__":
    key = jax.random.PRNGKey(0)
    ks = jax.random.split(key, 17)
    B = 2

    x = jax.random.normal(ks[0], (B, IN_FEATURES), jnp.float32)

    # ---- deterministic synthetic parameters (module __init__ gives the shapes;
    #      torch inits them to zeros / BN defaults — random here so the kernel
    #      exercises non-trivial numerics).
    input_weight = 0.1 * jax.random.normal(ks[1], (800,), jnp.float32)
    input_bias = 0.1 * jax.random.normal(ks[2], (64,), jnp.float32)
    bn1_gamma = 1.0 + 0.1 * jax.random.normal(ks[3], (64,), jnp.float32)
    bn1_beta = 0.1 * jax.random.normal(ks[4], (64,), jnp.float32)
    bn1_mean = 0.1 * jax.random.normal(ks[5], (64,), jnp.float32)
    bn1_var = jax.random.uniform(ks[6], (64,), jnp.float32, 0.5, 1.5)
    feature_mask = jax.random.normal(ks[7], (64,), jnp.float32)
    # TODO(synk): torch declares classifier_weight1 with 1056 elements but the
    # forward slices [:64*64]=4096 (would raise in torch); allocate 4096 here.
    classifier_weight1 = 0.1 * jax.random.normal(ks[8], (H2 * H2,), jnp.float32)
    classifier_bias1 = 0.1 * jax.random.normal(ks[9], (64,), jnp.float32)
    bn2_gamma = 1.0 + 0.1 * jax.random.normal(ks[10], (64,), jnp.float32)
    bn2_beta = 0.1 * jax.random.normal(ks[11], (64,), jnp.float32)
    bn2_mean = 0.1 * jax.random.normal(ks[12], (64,), jnp.float32)
    bn2_var = jax.random.uniform(ks[13], (64,), jnp.float32, 0.5, 1.5)
    # TODO(synk): torch declares final_weight with 224 elements but the forward
    # slices [:64*6]=384 (would raise in torch); allocate 384 here.
    final_weight = 0.1 * jax.random.normal(ks[14], (H2 * NUM_CLASSES,), jnp.float32)
    final_bias = 0.1 * jax.random.normal(ks[15], (6,), jnp.float32)

    raw = {
        # torch F.linear uses W (out, in); store transposed as (in, out).
        "w1": input_weight[: IN_FEATURES * H1].reshape(H1, IN_FEATURES).T,
        "b1": input_bias[:H1],
        # TODO(synk): BatchNorm1d(64) is applied to a 32-feature tensor in the
        # reference (shape mismatch in torch); use its first 32 channels here.
        "g1": bn1_gamma[:H1], "be1": bn1_beta[:H1],
        "m1": bn1_mean[:H1], "v1": bn1_var[:H1],
        "fmask": feature_mask,
        "w2": classifier_weight1[: H2 * H2].reshape(H2, H2).T,
        "b2": classifier_bias1[:H2],
        "g2": bn2_gamma, "be2": bn2_beta, "m2": bn2_mean, "v2": bn2_var,
        "w3": final_weight[: H2 * NUM_CLASSES].reshape(NUM_CLASSES, H2).T,
        "b3": final_bias,
    }

    folded = fold_params(raw, compute_dtype=jnp.bfloat16)

    # ---- test 1: the spec's small shape (B=2), single grid step.
    out = legacy_node_model_forward(x, folded)
    out = jax.block_until_ready(out)
    ref = _reference(x.reshape(B, -1), raw)
    np.testing.assert_allclose(np.asarray(out), np.asarray(ref), rtol=2e-2, atol=2e-2)

    # ---- test 2: B not a multiple of the batch tile (partial last block) and
    #      a 2-step "parallel" grid (the v7x two-TensorCore path).
    B2 = 20
    x2 = jax.random.normal(ks[16], (B2, IN_FEATURES), jnp.float32)
    out2 = legacy_node_model_forward(x2, folded, tile_b=16)
    out2 = jax.block_until_ready(out2)
    ref2 = _reference(x2, raw)
    np.testing.assert_allclose(np.asarray(out2), np.asarray(ref2), rtol=2e-2, atol=2e-2)

    print("KERNEL_OK")
</pallas_src>

<mosaic_0001>
module attributes {stable_mosaic.version = 11 : i64} {
  func.func @_legacy_node_kernel(%arg0: i32, %arg1: memref<16x24xf32, #tpu.memory_space<vmem>>, %arg2: memref<24x32xbf16, #tpu.memory_space<vmem>>, %arg3: memref<1x32xf32, #tpu.memory_space<vmem>>, %arg4: memref<32x64xbf16, #tpu.memory_space<vmem>>, %arg5: memref<1x64xf32, #tpu.memory_space<vmem>>, %arg6: memref<64x8xbf16, #tpu.memory_space<vmem>>, %arg7: memref<1x8xf32, #tpu.memory_space<vmem>>, %arg8: memref<16x8xf32, #tpu.memory_space<vmem>>) attributes {dimension_semantics = [#tpu.dimension_semantics<parallel>], iteration_bounds = array<i64: 1>, scalar_prefetch = 0 : i64, scratch_operands = 0 : i64, tpu.core_type = #tpu.core_type<tc>, window_params = [{transform_indices = @transform_0, window_bounds = array<i64: 16, 24>}, {pipeline_mode = #tpu.pipeline_mode<synchronous>, transform_indices = @transform_1, window_bounds = array<i64: 24, 32>}, {pipeline_mode = #tpu.pipeline_mode<synchronous>, transform_indices = @transform_2, window_bounds = array<i64: 1, 32>}, {pipeline_mode = #tpu.pipeline_mode<synchronous>, transform_indices = @transform_3, window_bounds = array<i64: 32, 64>}, {pipeline_mode = #tpu.pipeline_mode<synchronous>, transform_indices = @transform_4, window_bounds = array<i64: 1, 64>}, {pipeline_mode = #tpu.pipeline_mode<synchronous>, transform_indices = @transform_5, window_bounds = array<i64: 64, 8>}, {pipeline_mode = #tpu.pipeline_mode<synchronous>, transform_indices = @transform_6, window_bounds = array<i64: 1, 8>}, {transform_indices = @transform_7, window_bounds = array<i64: 16, 8>}]} {
    %c0 = arith.constant 0 : index
    %c0_0 = arith.constant 0 : index
    %0 = vector.load %arg1[%c0, %c0_0] : memref<16x24xf32, #tpu.memory_space<vmem>>, vector<16x24xf32>
    %1 = arith.truncf %0 : vector<16x24xf32> to vector<16x24xbf16>
    %c0_1 = arith.constant 0 : index
    %c0_2 = arith.constant 0 : index
    %2 = vector.load %arg2[%c0_1, %c0_2] : memref<24x32xbf16, #tpu.memory_space<vmem>>, vector<24x32xbf16>
    %cst = arith.constant dense<0.000000e+00> : vector<16x32xf32>
    %3 = tpu.matmul %1, %2, %cst {dimension_numbers = #tpu.dot_dimension_numbers<[1], [0], [0], [1], [0, 0, 1, 1], [], []>} : vector<16x24xbf16>, vector<24x32xbf16>, vector<16x32xf32> -> vector<16x32xf32>
    %c0_3 = arith.constant 0 : index
    %c0_4 = arith.constant 0 : index
    %4 = vector.load %arg3[%c0_3, %c0_4] : memref<1x32xf32, #tpu.memory_space<vmem>>, vector<1x32xf32>
    %5 = vector.broadcast %4 : vector<1x32xf32> to vector<16x32xf32>
    %6 = arith.addf %3, %5 : vector<16x32xf32>
    %cst_5 = arith.constant 0.000000e+00 : f32
    %7 = vector.broadcast %cst_5 : f32 to vector<16x32xf32>
    %8 = arith.maximumf %6, %7 : vector<16x32xf32>
    %cst_6 = arith.constant 1.000000e+01 : f32
    %9 = vector.broadcast %cst_6 : f32 to vector<16x32xf32>
    %10 = arith.minimumf %8, %9 : vector<16x32xf32>
    %11 = arith.truncf %10 : vector<16x32xf32> to vector<16x32xbf16>
    %c0_7 = arith.constant 0 : index
    %c0_8 = arith.constant 0 : index
    %12 = vector.load %arg4[%c0_7, %c0_8] : memref<32x64xbf16, #tpu.memory_space<vmem>>, vector<32x64xbf16>
    %cst_9 = arith.constant dense<0.000000e+00> : vector<16x64xf32>
    %13 = tpu.matmul %11, %12, %cst_9 {dimension_numbers = #tpu.dot_dimension_numbers<[1], [0], [0], [1], [0, 0, 1, 1], [], []>} : vector<16x32xbf16>, vector<32x64xbf16>, vector<16x64xf32> -> vector<16x64xf32>
    %c0_10 = arith.constant 0 : index
    %c0_11 = arith.constant 0 : index
    %14 = vector.load %arg5[%c0_10, %c0_11] : memref<1x64xf32, #tpu.memory_space<vmem>>, vector<1x64xf32>
    %15 = vector.broadcast %14 : vector<1x64xf32> to vector<16x64xf32>
    %16 = arith.addf %13, %15 : vector<16x64xf32>
    %cst_12 = arith.constant 0.000000e+00 : f32
    %17 = vector.broadcast %cst_12 : f32 to vector<16x64xf32>
    %18 = arith.maximumf %16, %17 : vector<16x64xf32>
    %19 = arith.truncf %18 : vector<16x64xf32> to vector<16x64xbf16>
    %c0_13 = arith.constant 0 : index
    %c0_14 = arith.constant 0 : index
    %20 = vector.load %arg6[%c0_13, %c0_14] : memref<64x8xbf16, #tpu.memory_space<vmem>>, vector<64x8xbf16>
    %cst_15 = arith.constant dense<0.000000e+00> : vector<16x8xf32>
    %21 = tpu.matmul %19, %20, %cst_15 {dimension_numbers = #tpu.dot_dimension_numbers<[1], [0], [0], [1], [0, 0, 1, 1], [], []>} : vector<16x64xbf16>, vector<64x8xbf16>, vector<16x8xf32> -> vector<16x8xf32>
    %c0_16 = arith.constant 0 : index
    %c0_17 = arith.constant 0 : index
    %22 = vector.load %arg7[%c0_16, %c0_17] : memref<1x8xf32, #tpu.memory_space<vmem>>, vector<1x8xf32>
    %23 = vector.broadcast %22 : vector<1x8xf32> to vector<16x8xf32>
    %24 = arith.addf %21, %23 : vector<16x8xf32>
    %c0_18 = arith.constant 0 : index
    %c0_19 = arith.constant 0 : index
    %25 = vector.load %arg8[%c0_18, %c0_19] : memref<16x8xf32, #tpu.memory_space<vmem>>, vector<16x8xf32>
    tpu.vector_store %arg8[%c0_18, %c0_19], %24 {strides = array<i32>} : memref<16x8xf32, #tpu.memory_space<vmem>>, vector<16x8xf32>,
    return
  }
  func.func @transform_0(%arg0: i32) -> (i32, i32) {
    %c0_i32 = arith.constant 0 : i32
    %c0_i32_0 = arith.constant 0 : i32
    return %arg0, %c0_i32 : i32, i32
  }
  func.func @transform_1(%arg0: i32) -> (i32, i32) {
    %c0_i32 = arith.constant 0 : i32
    %c0_i32_0 = arith.constant 0 : i32
    %c0_i32_1 = arith.constant 0 : i32
    return %c0_i32, %c0_i32_0 : i32, i32
  }
  func.func @transform_2(%arg0: i32) -> (i32, i32) {
    %c0_i32 = arith.constant 0 : i32
    %c0_i32_0 = arith.constant 0 : i32
    %c0_i32_1 = arith.constant 0 : i32
    return %c0_i32, %c0_i32_0 : i32, i32
  }
  func.func @transform_3(%arg0: i32) -> (i32, i32) {
    %c0_i32 = arith.constant 0 : i32
    %c0_i32_0 = arith.constant 0 : i32
    %c0_i32_1 = arith.constant 0 : i32
    return %c0_i32, %c0_i32_0 : i32, i32
  }
  func.func @transform_4(%arg0: i32) -> (i32, i32) {
    %c0_i32 = arith.constant 0 : i32
    %c0_i32_0 = arith.constant 0 : i32
    %c0_i32_1 = arith.constant 0 : i32
    return %c0_i32, %c0_i32_0 : i32, i32
  }
  func.func @transform_5(%arg0: i32) -> (i32, i32) {
    %c0_i32 = arith.constant 0 : i32
    %c0_i32_0 = arith.constant 0 : i32
    %c0_i32_1 = arith.constant 0 : i32
    return %c0_i32, %c0_i32_0 : i32, i32
  }
  func.func @transform_6(%arg0: i32) -> (i32, i32) {
    %c0_i32 = arith.constant 0 : i32
    %c0_i32_0 = arith.constant 0 : i32
    %c0_i32_1 = arith.constant 0 : i32
    return %c0_i32, %c0_i32_0 : i32, i32
  }
  func.func @transform_7(%arg0: i32) -> (i32, i32) {
    %c0_i32 = arith.constant 0 : i32
    %c0_i32_0 = arith.constant 0 : i32
    return %arg0, %c0_i32 : i32, i32
  }
}

</mosaic_0001>

<bundles_post_ra>
// kernel: tpu_custom_call.1
= control target key start
LH: loop header
LB: loop body
LE: loop exit
PB: predicated region body
PF: predicated region fallthrough
CT: control target
= control target key end

     0   :  { %12 = vsyncpa [#allocation3], 0  ;;  %vm54_vm0 = vcmask 1043456   ;;  %v366_v0 = vmov 0.0   ;;  %vm367_vm1 = vmmov 0   ;;  %vm50_vm2 = vcmask 195584   ;;  %s453_s0 = inlined_call_operand.vmem [shape: f32[2,24], index: 0, kind: input, shape index: {}]   ;;  %s454_s1 = inlined_call_operand.vmem [shape: bf16[24,32], index: 1, kind: input, shape index: {}]   ;;  %s455_s2 = inlined_call_operand.vmem [shape: f32[1,32], index: 2, kind: input, shape index: {}]   ;;  %s456_s3 = inlined_call_operand.vmem [shape: bf16[32,64], index: 3, kind: input, shape index: {}]   ;;  %s457_s4 = inlined_call_operand.vmem [shape: f32[1,64], index: 4, kind: input, shape index: {}]   ;;  %s458_s5 = inlined_call_operand.vmem [shape: bf16[64,8], index: 5, kind: input, shape index: {}]   ;;  %s459_s6 = inlined_call_operand.vmem [shape: f32[1,8], index: 6, kind: input, shape index: {}]   ;;  %s460_s7 = inlined_call_operand.hbm [shape: f32[2,8], index: 7, kind: output, shape index: {}]  }
   0x1   :  { %303 = vmatprep.subr.bf16.mxu1 %v366_v0  ;;  %v336_v1 = vld [vmem:[%s454_s1 + $0x8] ss:$0 sps:$4 sm:$0xff]   ;;  %319 = vmatprep.subr.bf16.mxu0 %v366_v0  ;;  %v337_v2 = vld [vmem:[%s454_s1] sm:$0xff]   ;;  %v340_v9 = vld [vmem:[%s458_s5 + $0x18] sm:$0xff]   ;;  %vm127_vm3 = vcmask 261120   ;;  %vm214_vm4 = vcmask 523264  }
   0x2   :  { %v56_v3 = vsel %vm54_vm0, %v336_v1, 0  ;;  %307 = vmatprep.mubr.msk.bf16.mxu1 %vm367_vm1, %v366_v0  ;;  %v28_v4 = vld [vmem:[%s453_s0] sm:$0xff]  ;;  %v29_v5 = vld [vmem:[%s453_s0 + $0x8] sm:$0xff]  ;;  %327 = vmatprep.mubr.msk.bf16.mxu0 %vm367_vm1, %v366_v0  ;;  %v341_v22 = vld [vmem:[%s458_s5 + $0x10] sm:$0xff]   ;;  %vm259_vm5 = vcmask 64512  }
   0x3   :  { %304 = vmatpush3.bf16.msra.mxu1 %v56_v3  ;;  %v30_v6 = vpack.c.bf16 %v29_v5, %v28_v4  ;;  %v338_v7 = vld [vmem:[%s456_s3 + $0x8] sm:$0xff]   ;;  %v339_v8 = vld [vmem:[%s456_s3] sm:$0xff]   ;;  %320 = vmatpush3.bf16.msra.mxu0 %v340_v9 }
   0x4   :  { %305 = vmatprep.subr.bf16.mxu1 %v366_v0  ;;  %321 = vmatprep.subr.bf16.mxu0 %v366_v0  ;;  %v278_v10 = vld [vmem:[%s455_s2] ss:$0 sm:$0xff]  ;;  %v342_v23 = vld [vmem:[%s458_s5 + $0x8] sm:$0xff]  }
   0x5   :  { %v343_v24 = vld [vmem:[%s458_s5] sm:$0xff]  }
   0x6   :  { %v282_v25 = vld [vmem:[%s457_s4] ss:$0 sm:$0xff] }
   0x7   :  { %306 = vmatpush3.bf16.msra.mxu1 %v337_v2  ;;  %322 = vmatpush3.bf16.msra.mxu0 %v341_v22  ;;  %v286_v35 = vld [vmem:[%s459_s6] ss:$0 sm:$0xff] }
   0x8   :  { %311 = vmatprep.subr.bf16.mxu1 %v366_v0  ;;  %323 = vmatprep.subr.bf16.mxu0 %v366_v0 }
   0xa   :  { %308 = vmatmul.mubr.msk.bf16.vlgmr.msra.gmra.mxu1 %vm50_vm2, %v30_v6 }
   0xb   :  { %315 = vmatprep.mubr.msk.bf16.mxu1 %vm367_vm1, %v366_v0  ;;  %312 = vmatpush3.bf16.msra.mxu1 %v338_v7 }
   0xc   :  { %313 = vmatprep.subr.bf16.mxu1 %v366_v0  ;;  %324 = vmatpush3.bf16.msra.mxu0 %v342_v23 }
   0xd   :  { %325 = vmatprep.subr.bf16.mxu0 %v366_v0 }
   0xf   :  { %314 = vmatpush3.bf16.msra.mxu1 %v339_v8 }
  0x10   :  { %326 = vmatpush3.bf16.msra.mxu0 %v343_v24 }
  0xca   :  { %v92_v11 = vpop.f32.mrf.mxu1 }
  0xcb   :  { %v93_v12 = vadd.f32 %v278_v10, %v92_v11 }
  0xcc   :  { %v309_v13 = vpop.f32.mrf.mxu1 }
  0xcd   :  { %v99_v15 = vmax.f32 %v93_v12, 0.0 }
  0xce   :  { %v95_v14 = vpop.f32.mrf.mxu1 }
  0xcf   :  { %v96_v16 = vadd.f32 %v278_v10, %v95_v14  ;;  %v101_v19 = vmin.f32 %v99_v15, 10.0 }
  0xd0   :  { %v310_v17 = vpop.f32.mrf.mxu1 }
  0xd1   :  { %v100_v18 = vmax.f32 %v96_v16, 0.0 }
  0xd3   :  { %v102_v20 = vmin.f32 %v100_v18, 10.0 }
  0xd5   :  { %v103_v21 = vpack.c.bf16 %v102_v20, %v101_v19 }
  0xd7   :  { %316 = vmatmul.mubr.msk.bf16.vlgmr.msra.gmra.mxu1 %vm127_vm3, %v103_v21 }
 0x197   :  { %v165_v26 = vpop.f32.mrf.mxu1 }
 0x198   :  { %v166_v28 = vadd.f32 %v282_v25, %v165_v26 }
 0x199   :  { %v317_v27 = vpop.f32.mrf.mxu1 }
 0x19a   :  { %v172_v32 = vmax.f32 %v166_v28, 0.0 }
 0x19b   :  { %v168_v29 = vpop.f32.mrf.mxu1 }
 0x19c   :  { %v169_v30 = vadd.f32 %v282_v25, %v168_v29 }
 0x19d   :  { %v318_v31 = vpop.f32.mrf.mxu1 }
 0x19e   :  { %v173_v33 = vmax.f32 %v169_v30, 0.0 }
 0x1a0   :  { %v174_v34 = vpack.c.bf16 %v173_v33, %v172_v32 }
 0x1a2   :  { %328 = vmatmul.mubr.msk.bf16.vlgmr.msra.gmra.mxu0 %vm214_vm4, %v174_v34 }
 0x262   :  { %v252_v36 = vpop.f32.mrf.mxu0 }
 0x263   :  { %v253_v37 = vadd.f32 %v286_v35, %v252_v36 }
 0x264   :  { %v329_v38 = vpop.f32.mrf.mxu0 }
 0x265   :  { %260 = vst.msk [vmem:[#allocation2] sm:$0xff] %vm259_vm5, %v253_v37 }
 0x266   :  { %v255_v39 = vpop.f32.mrf.mxu0 }
 0x267   :  { %v256_v40 = vadd.f32 %v286_v35, %v255_v39 }
 0x268   :  { %v330_v41 = vpop.f32.mrf.mxu0 }
 0x269   :  { %261 = vst.msk [vmem:[#allocation2 + $0x8] sm:$0xff] %vm259_vm5, %v256_v40 }
 0x26a   :  { %266 = vsyncadd [#allocation3], 224  ;;  %s368_s4 = smov [#allocation2]  }
 0x26b   :  { %s267_s5 = sshll.u32 %s368_s4, 4  ;;  %s268_s5 = int_to_ptr.vmem [resolvable:$true] %s267_s5 }
 0x26c   :  { %s344_s23 = scalar_lea.vmem %s268_s5, 32  ;;  %s348_s24 = scalar_lea.vmem %s268_s5, 256 }
 0x26d   :  { %p345_p0 = scmp.ne.s32.totalorder %s268_s5, %s344_s23  ;;  %p349_p1 = scmp.lt.s32.totalorder %s268_s5, %s268_s5 }
 0x26e   :  { %p350_p2 = scmp.lt.s32.totalorder %s348_s24, %s344_s23 }
 0x270   :  { %p351_p3 = por %p350_p2, %p349_p1 }
 0x272   :  { %p352_p4 = pnand %p351_p3, %p345_p0 }
 0x274   :  { %355 = shalt.err (!%p352_p4)
}
 0x275   :  { %s369_s6 = smov 32   ;;  %s370_s25 = smov 2  }
 0x276   :  { %273 = dma.vmem_to_hbm [thread:$0]  %s268_s5, 32, %s460_s7, [#allocation3], %s369_s6, %s369_s6, %s370_s25  }
 0x277   :  { %364 = dma.done.wait [#allocation3], 256  }
 0x278   :  { %365 = vsyncadd [#allocation3], 4294967040 }
 0x279   :  { %277 = vsyncpa [#allocation3], 1 }

</bundles_post_ra>
